<compile_context>
chip_gen: v7x
topology: tpu7x:2x2x1
jax: 0.10.0
libtpu: 0.0.40
codegen_flags: <defaults>
</compile_context>

<pallas_src>
import functools

import jax
import jax.numpy as jnp
from jax.experimental import pallas as pl
from jax.experimental.pallas import tpu as pltpu


# ----------------------------------------------------------------------------
# Per-generation VMEM budgets.
# ----------------------------------------------------------------------------
def _vmem_capacity_bytes():
    try:
        info = pltpu.get_tpu_info()
        for attr in ("vmem_capacity_bytes", "vmem_size_bytes", "vmem_bytes"):
            v = getattr(info, attr, None)
            if v:
                return int(v)
    except Exception:
        pass
    return 64 * 1024 * 1024              # conservative default (v7x per-TC VMEM)


def _budgets():
    """(per-chunk streamed-weight budget, vmem_limit_bytes), per generation."""
    cap = _vmem_capacity_bytes()
    if cap >= 100 * 1024 * 1024:         # v5e / v6e: 128 MiB physical VMEM
        return 12 * 1024 * 1024, 96 * 1024 * 1024
    return 5 * 1024 * 1024, 48 * 1024 * 1024     # v7x: 64 MiB per-TC VMEM


def _per_position_bytes(H, O, n_layers):
    b = 4 * (H * O + O)
    if n_layers == 2:
        b += 4 * (H * H + H)
    return b


def _choose_tl(Lp, per_pos_bytes, chunk_budget):
    """Positions per grid step.  A chunk is legal iff TL == Lp or TL % 128 == 0
    (keeps every block lane-dense / unmasked).  Pick the largest legal chunk
    under the budget so the ~0.35us per-step pipeline overhead is amortized,
    but keep >=2 grid steps when it is free so v7x megacore can split the grid
    across its two TensorCores."""
    cands = [Lp] + [t for t in range(128, Lp, 128) if Lp % t == 0]
    fitting = [t for t in cands if t * per_pos_bytes <= chunk_budget]
    tl = max(fitting) if fitting else min(cands)     # graceful fallback
    if tl == Lp and Lp % 2 == 0 and (Lp // 2) % 128 == 0:
        tl = Lp // 2                                  # 2 steps -> feed both v7x TCs
    return tl


# ----------------------------------------------------------------------------
# Kernels.
# ----------------------------------------------------------------------------
def _grouped_log_softmax(slabs):
    """Log-softmax where the softmax group axis is the Python list index.
    Pure elementwise VPU/EUP work on full-width (Bp, TL) tiles -- no 16-lane
    slices, no cross-lane reductions, no masks."""
    m = slabs[0]
    for s in slabs[1:]:
        m = jnp.maximum(m, s)
    denom = jnp.exp(slabs[0] - m)
    for s in slabs[1:]:
        denom = denom + jnp.exp(s - m)
    lse = m + jnp.log(denom)
    return [s - lse for s in slabs]


def _decoder_kernel_1layer(x_ref, w_ref, b_ref, o_ref):
    # x_ref: (Bp, H)   w_ref: (O, H, TL)   b_ref: (O, 1, TL)   o_ref: (O, Bp, TL)
    x = x_ref[...]
    n_out = w_ref.shape[0]
    slabs = [jnp.dot(x, w_ref[o], preferred_element_type=jnp.float32) + b_ref[o]
             for o in range(n_out)]                  # O lane-dense MXU matmuls
    out = _grouped_log_softmax(slabs)
    for o in range(n_out):
        # Full-width unmasked store of a contiguous (Bp, TL) slab (major-axis index).
        o_ref[o] = out[o].astype(o_ref.dtype)


def _decoder_kernel_2layer(x_ref, w1_ref, b1_ref, w2_ref, b2_ref, o_ref):
    # x_ref : (Bp, H)
    # w1_ref: (H, H, TL)  [j, i, t] == W1[t, i, j];  b1_ref: (H, 1, TL)
    # w2_ref: (O, H, TL)  [o, j, t] == W2[t, j, o];  b2_ref: (O, 1, TL)
    # o_ref : (O, Bp, TL)
    x = x_ref[...]
    hidden = w1_ref.shape[0]
    n_out = w2_ref.shape[0]

    # Layer 1: one lane-dense (Bp,H)@(H,TL) MXU matmul per hidden output unit j.
    hs = []
    for j in range(hidden):
        hj = jnp.dot(x, w1_ref[j], preferred_element_type=jnp.float32) + b1_ref[j]
        hs.append(jnp.maximum(hj, 0.0))
    # TODO(synk): dropout is identity in eval mode; training-mode dropout not implemented.

    # Layer 2: out_o[b,t] = sum_j hs[j][b,t] * W2[t,j,o]  -> full-width VPU mul-adds.
    slabs = []
    for o in range(n_out):
        w2_o = w2_ref[o]                             # (H, TL), lane-dense
        acc = b2_ref[o] + hs[0] * w2_o[0:1, :]
        for j in range(1, hidden):
            acc = acc + hs[j] * w2_o[j:j + 1, :]
        slabs.append(acc)

    out = _grouped_log_softmax(slabs)
    for o in range(n_out):
        o_ref[o] = out[o].astype(o_ref.dtype)


# ----------------------------------------------------------------------------
# Parameter preparation (hoisted out of the forward: done once).
# ----------------------------------------------------------------------------
def prepare_decoder_params(params, *, n_layers=1):
    """Convert PyTorch-layout parameters into the kernel's lane-dense slab
    layout (output unit on the major axis, position on the lane axis), zero-
    padding the position axis to a multiple of 128 only when chunking will be
    needed.  Call once; the forward pays no per-call weight transpose traffic."""
    w_out = params["w_out"]                          # (L, H, O)
    b_out = params["b_out"]                          # (L, O)
    L, H, O = w_out.shape
    chunk_budget, _ = _budgets()
    per_pos = _per_position_bytes(H, O, n_layers)
    if L % 128 == 0 or L * per_pos <= chunk_budget:
        Lp = L                                       # aligned, or fits in one chunk
    else:
        Lp = ((L + 127) // 128) * 128                # make 128-multiple chunks legal

    def pad_l(a):
        if Lp == L:
            return a
        return jnp.pad(a, [(0, 0)] * (a.ndim - 1) + [(0, Lp - L)])

    prep = {
        "w_out": pad_l(jnp.transpose(w_out, (2, 1, 0))),                  # (O, H, Lp)
        "b_out": pad_l(jnp.transpose(b_out, (1, 0))[:, None, :]),          # (O, 1, Lp)
    }
    if n_layers == 2:
        prep["w1"] = pad_l(jnp.transpose(params["w1"], (2, 1, 0)))         # (H, H, Lp)
        prep["b1"] = pad_l(jnp.transpose(params["b1"], (1, 0))[:, None, :])  # (H, 1, Lp)
    return prep


# ----------------------------------------------------------------------------
# Forward.
# ----------------------------------------------------------------------------
def redmulnet_decoder_forward(x, prep, *, n_layers=1, output_len=None):
    """x: (B, H, 1) float32 (PyTorch NCL layout, L_in == 1).  `prep` comes from
    prepare_decoder_params.  Returns (B*output_len, output_size) log-probs,
    matching RedMulNetDecoder.forward in eval mode."""
    assert x.ndim == 3 and x.shape[-1] == 1
    x2d = x[..., 0]                                  # (B, H)
    B, H = x2d.shape
    O, _, Lp = prep["w_out"].shape
    L = Lp if output_len is None else output_len

    # Pad batch to a multiple of 8 sublanes (min 8) so vector ops stay unmasked.
    Bp = max(8, ((B + 7) // 8) * 8)
    if Bp != B:
        x2d = jnp.pad(x2d, ((0, Bp - B), (0, 0)))

    chunk_budget, vmem_limit = _budgets()
    TL = _choose_tl(Lp, _per_position_bytes(H, O, n_layers), chunk_budget)
    num_chunks = Lp // TL

    x_spec = pl.BlockSpec((Bp, H), lambda j: (0, 0))
    wo_spec = pl.BlockSpec((O, H, TL), lambda j: (0, 0, j))
    bo_spec = pl.BlockSpec((O, 1, TL), lambda j: (0, 0, j))
    out_spec = pl.BlockSpec((O, Bp, TL), lambda j: (0, 0, j))
    out_shape = jax.ShapeDtypeStruct((O, Bp, Lp), jnp.float32)
    cparams = pltpu.CompilerParams(
        dimension_semantics=("parallel",),           # v7x: chunks shard across 2 TCs
        vmem_limit_bytes=vmem_limit,
    )

    if n_layers == 2:
        w1_spec = pl.BlockSpec((H, H, TL), lambda j: (0, 0, j))
        b1_spec = pl.BlockSpec((H, 1, TL), lambda j: (0, 0, j))
        out = pl.pallas_call(
            _decoder_kernel_2layer,
            out_shape=out_shape,
            grid_spec=pltpu.PrefetchScalarGridSpec(
                num_scalar_prefetch=0,
                grid=(num_chunks,),
                in_specs=[x_spec, w1_spec, b1_spec, wo_spec, bo_spec],
                out_specs=out_spec,
            ),
            compiler_params=cparams,
        )(x2d, prep["w1"], prep["b1"], prep["w_out"], prep["b_out"])
    else:
        out = pl.pallas_call(
            _decoder_kernel_1layer,
            out_shape=out_shape,
            grid_spec=pltpu.PrefetchScalarGridSpec(
                num_scalar_prefetch=0,
                grid=(num_chunks,),
                in_specs=[x_spec, wo_spec, bo_spec],
                out_specs=out_spec,
            ),
            compiler_params=cparams,
        )(x2d, prep["w_out"], prep["b_out"])

    # (O, Bp, Lp) -> drop batch/position padding -> (B, L, O) -> (B*L, O).
    # Tiny logits transpose left to XLA; negligible next to the weight stream.
    return jnp.transpose(out[:, :B, :L], (1, 2, 0)).reshape(B * L, O)


# ----------------------------------------------------------------------------
# Parameter init (PyTorch-like logical layout) and pure-JAX reference.
# ----------------------------------------------------------------------------
def init_params(key, hidden_size, output_size, output_len, n_layers=1):
    ks = jax.random.split(key, 4)
    scale = 1.0 / jnp.sqrt(hidden_size)
    params = {
        "w_out": jax.random.uniform(
            ks[0], (output_len, hidden_size, output_size),
            minval=-scale, maxval=scale, dtype=jnp.float32),
        "b_out": jax.random.uniform(
            ks[1], (output_len, output_size),
            minval=-scale, maxval=scale, dtype=jnp.float32),
    }
    if n_layers == 2:
        params["w1"] = jax.random.uniform(
            ks[2], (output_len, hidden_size, hidden_size),
            minval=-scale, maxval=scale, dtype=jnp.float32)
        params["b1"] = jax.random.uniform(
            ks[3], (output_len, hidden_size),
            minval=-scale, maxval=scale, dtype=jnp.float32)
    return params


def _reference(x, params, n_layers=1):
    # Pure-JAX reference of the PyTorch forward (eval mode).
    x2d = x[..., 0]                                  # (B, H)
    rep = jnp.broadcast_to(x2d[:, None, :],
                           (x2d.shape[0], params["w_out"].shape[0], x2d.shape[1]))
    if n_layers == 2:
        rep = jax.nn.relu(
            jnp.einsum("blh,lhk->blk", rep, params["w1"]) + params["b1"][None])
    logits = jnp.einsum("blh,lho->blo", rep, params["w_out"]) + params["b_out"][None]
    logits = logits.reshape(-1, logits.shape[-1])
    return jax.nn.log_softmax(logits, axis=-1)


if __name__ == "__main__":
    batch, hidden, output_size, output_len = 2, 32, 16, 8

    key = jax.random.PRNGKey(0)
    kx, kp = jax.random.split(key)
    x = jax.random.normal(kx, (batch, hidden, 1), dtype=jnp.float32)

    for n_layers in (1, 2):
        params = init_params(kp, hidden, output_size, output_len, n_layers=n_layers)
        prep = prepare_decoder_params(params, n_layers=n_layers)   # hoisted, one-time
        fwd = jax.jit(functools.partial(redmulnet_decoder_forward,
                                        n_layers=n_layers, output_len=output_len))
        out = fwd(x, prep)
        jax.block_until_ready(out)

        ref = _reference(x, params, n_layers=n_layers)
        assert out.shape == (batch * output_len, output_size)
        assert jnp.allclose(out, ref, atol=5e-5, rtol=5e-5), (
            f"mismatch vs reference (n_layers={n_layers})")

    print("KERNEL_OK")
</pallas_src>

<mosaic_0001>
module attributes {stable_mosaic.version = 11 : i64} {
  func.func @_decoder_kernel_1layer(%arg0: i32, %arg1: memref<8x32xf32, #tpu.memory_space<vmem>>, %arg2: memref<16x32x8xf32, #tpu.memory_space<vmem>>, %arg3: memref<16x1x8xf32, #tpu.memory_space<vmem>>, %arg4: memref<16x8x8xf32, #tpu.memory_space<vmem>>) attributes {dimension_semantics = [#tpu.dimension_semantics<parallel>], iteration_bounds = array<i64: 1>, scalar_prefetch = 0 : i64, scratch_operands = 0 : i64, tpu.core_type = #tpu.core_type<tc>, window_params = [{pipeline_mode = #tpu.pipeline_mode<synchronous>, transform_indices = @transform_0, window_bounds = array<i64: 8, 32>}, {transform_indices = @transform_1, window_bounds = array<i64: 16, 32, 8>}, {transform_indices = @transform_2, window_bounds = array<i64: 16, 1, 8>}, {transform_indices = @transform_3, window_bounds = array<i64: 16, 8, 8>}]} {
    %c0 = arith.constant 0 : index
    %c0_0 = arith.constant 0 : index
    %0 = vector.load %arg1[%c0, %c0_0] : memref<8x32xf32, #tpu.memory_space<vmem>>, vector<8x32xf32>
    %c0_1 = arith.constant 0 : index
    %c0_2 = arith.constant 0 : index
    %c0_3 = arith.constant 0 : index
    %1 = vector.load %arg2[%c0_1, %c0_2, %c0_3] : memref<16x32x8xf32, #tpu.memory_space<vmem>>, vector<1x32x8xf32>
    %2 = vector.shape_cast %1 : vector<1x32x8xf32> to vector<32x8xf32>
    %cst = arith.constant dense<0.000000e+00> : vector<8x8xf32>
    %3 = tpu.matmul %0, %2, %cst {dimension_numbers = #tpu.dot_dimension_numbers<[1], [0], [0], [1], [0, 0, 1, 1], [], []>} : vector<8x32xf32>, vector<32x8xf32>, vector<8x8xf32> -> vector<8x8xf32>
    %c0_4 = arith.constant 0 : index
    %c0_5 = arith.constant 0 : index
    %c0_6 = arith.constant 0 : index
    %4 = vector.load %arg3[%c0_4, %c0_5, %c0_6] : memref<16x1x8xf32, #tpu.memory_space<vmem>>, vector<1x1x8xf32>
    %5 = vector.shape_cast %4 : vector<1x1x8xf32> to vector<1x8xf32>
    %6 = vector.broadcast %5 : vector<1x8xf32> to vector<8x8xf32>
    %7 = arith.addf %3, %6 : vector<8x8xf32>
    %c1 = arith.constant 1 : index
    %c0_7 = arith.constant 0 : index
    %c0_8 = arith.constant 0 : index
    %8 = vector.load %arg2[%c1, %c0_7, %c0_8] : memref<16x32x8xf32, #tpu.memory_space<vmem>>, vector<1x32x8xf32>
    %9 = vector.shape_cast %8 : vector<1x32x8xf32> to vector<32x8xf32>
    %cst_9 = arith.constant dense<0.000000e+00> : vector<8x8xf32>
    %10 = tpu.matmul %0, %9, %cst_9 {dimension_numbers = #tpu.dot_dimension_numbers<[1], [0], [0], [1], [0, 0, 1, 1], [], []>} : vector<8x32xf32>, vector<32x8xf32>, vector<8x8xf32> -> vector<8x8xf32>
    %c1_10 = arith.constant 1 : index
    %c0_11 = arith.constant 0 : index
    %c0_12 = arith.constant 0 : index
    %11 = vector.load %arg3[%c1_10, %c0_11, %c0_12] : memref<16x1x8xf32, #tpu.memory_space<vmem>>, vector<1x1x8xf32>
    %12 = vector.shape_cast %11 : vector<1x1x8xf32> to vector<1x8xf32>
    %13 = vector.broadcast %12 : vector<1x8xf32> to vector<8x8xf32>
    %14 = arith.addf %10, %13 : vector<8x8xf32>
    %c2 = arith.constant 2 : index
    %c0_13 = arith.constant 0 : index
    %c0_14 = arith.constant 0 : index
    %15 = vector.load %arg2[%c2, %c0_13, %c0_14] : memref<16x32x8xf32, #tpu.memory_space<vmem>>, vector<1x32x8xf32>
    %16 = vector.shape_cast %15 : vector<1x32x8xf32> to vector<32x8xf32>
    %cst_15 = arith.constant dense<0.000000e+00> : vector<8x8xf32>
    %17 = tpu.matmul %0, %16, %cst_15 {dimension_numbers = #tpu.dot_dimension_numbers<[1], [0], [0], [1], [0, 0, 1, 1], [], []>} : vector<8x32xf32>, vector<32x8xf32>, vector<8x8xf32> -> vector<8x8xf32>
    %c2_16 = arith.constant 2 : index
    %c0_17 = arith.constant 0 : index
    %c0_18 = arith.constant 0 : index
    %18 = vector.load %arg3[%c2_16, %c0_17, %c0_18] : memref<16x1x8xf32, #tpu.memory_space<vmem>>, vector<1x1x8xf32>
    %19 = vector.shape_cast %18 : vector<1x1x8xf32> to vector<1x8xf32>
    %20 = vector.broadcast %19 : vector<1x8xf32> to vector<8x8xf32>
    %21 = arith.addf %17, %20 : vector<8x8xf32>
    %c3 = arith.constant 3 : index
    %c0_19 = arith.constant 0 : index
    %c0_20 = arith.constant 0 : index
    %22 = vector.load %arg2[%c3, %c0_19, %c0_20] : memref<16x32x8xf32, #tpu.memory_space<vmem>>, vector<1x32x8xf32>
    %23 = vector.shape_cast %22 : vector<1x32x8xf32> to vector<32x8xf32>
    %cst_21 = arith.constant dense<0.000000e+00> : vector<8x8xf32>
    %24 = tpu.matmul %0, %23, %cst_21 {dimension_numbers = #tpu.dot_dimension_numbers<[1], [0], [0], [1], [0, 0, 1, 1], [], []>} : vector<8x32xf32>, vector<32x8xf32>, vector<8x8xf32> -> vector<8x8xf32>
    %c3_22 = arith.constant 3 : index
    %c0_23 = arith.constant 0 : index
    %c0_24 = arith.constant 0 : index
    %25 = vector.load %arg3[%c3_22, %c0_23, %c0_24] : memref<16x1x8xf32, #tpu.memory_space<vmem>>, vector<1x1x8xf32>
    %26 = vector.shape_cast %25 : vector<1x1x8xf32> to vector<1x8xf32>
    %27 = vector.broadcast %26 : vector<1x8xf32> to vector<8x8xf32>
    %28 = arith.addf %24, %27 : vector<8x8xf32>
    %c4 = arith.constant 4 : index
    %c0_25 = arith.constant 0 : index
    %c0_26 = arith.constant 0 : index
    %29 = vector.load %arg2[%c4, %c0_25, %c0_26] : memref<16x32x8xf32, #tpu.memory_space<vmem>>, vector<1x32x8xf32>
    %30 = vector.shape_cast %29 : vector<1x32x8xf32> to vector<32x8xf32>
    %cst_27 = arith.constant dense<0.000000e+00> : vector<8x8xf32>
    %31 = tpu.matmul %0, %30, %cst_27 {dimension_numbers = #tpu.dot_dimension_numbers<[1], [0], [0], [1], [0, 0, 1, 1], [], []>} : vector<8x32xf32>, vector<32x8xf32>, vector<8x8xf32> -> vector<8x8xf32>
    %c4_28 = arith.constant 4 : index
    %c0_29 = arith.constant 0 : index
    %c0_30 = arith.constant 0 : index
    %32 = vector.load %arg3[%c4_28, %c0_29, %c0_30] : memref<16x1x8xf32, #tpu.memory_space<vmem>>, vector<1x1x8xf32>
    %33 = vector.shape_cast %32 : vector<1x1x8xf32> to vector<1x8xf32>
    %34 = vector.broadcast %33 : vector<1x8xf32> to vector<8x8xf32>
    %35 = arith.addf %31, %34 : vector<8x8xf32>
    %c5 = arith.constant 5 : index
    %c0_31 = arith.constant 0 : index
    %c0_32 = arith.constant 0 : index
    %36 = vector.load %arg2[%c5, %c0_31, %c0_32] : memref<16x32x8xf32, #tpu.memory_space<vmem>>, vector<1x32x8xf32>
    %37 = vector.shape_cast %36 : vector<1x32x8xf32> to vector<32x8xf32>
    %cst_33 = arith.constant dense<0.000000e+00> : vector<8x8xf32>
    %38 = tpu.matmul %0, %37, %cst_33 {dimension_numbers = #tpu.dot_dimension_numbers<[1], [0], [0], [1], [0, 0, 1, 1], [], []>} : vector<8x32xf32>, vector<32x8xf32>, vector<8x8xf32> -> vector<8x8xf32>
    %c5_34 = arith.constant 5 : index
    %c0_35 = arith.constant 0 : index
    %c0_36 = arith.constant 0 : index
    %39 = vector.load %arg3[%c5_34, %c0_35, %c0_36] : memref<16x1x8xf32, #tpu.memory_space<vmem>>, vector<1x1x8xf32>
    %40 = vector.shape_cast %39 : vector<1x1x8xf32> to vector<1x8xf32>
    %41 = vector.broadcast %40 : vector<1x8xf32> to vector<8x8xf32>
    %42 = arith.addf %38, %41 : vector<8x8xf32>
    %c6 = arith.constant 6 : index
    %c0_37 = arith.constant 0 : index
    %c0_38 = arith.constant 0 : index
    %43 = vector.load %arg2[%c6, %c0_37, %c0_38] : memref<16x32x8xf32, #tpu.memory_space<vmem>>, vector<1x32x8xf32>
    %44 = vector.shape_cast %43 : vector<1x32x8xf32> to vector<32x8xf32>
    %cst_39 = arith.constant dense<0.000000e+00> : vector<8x8xf32>
    %45 = tpu.matmul %0, %44, %cst_39 {dimension_numbers = #tpu.dot_dimension_numbers<[1], [0], [0], [1], [0, 0, 1, 1], [], []>} : vector<8x32xf32>, vector<32x8xf32>, vector<8x8xf32> -> vector<8x8xf32>
    %c6_40 = arith.constant 6 : index
    %c0_41 = arith.constant 0 : index
    %c0_42 = arith.constant 0 : index
    %46 = vector.load %arg3[%c6_40, %c0_41, %c0_42] : memref<16x1x8xf32, #tpu.memory_space<vmem>>, vector<1x1x8xf32>
    %47 = vector.shape_cast %46 : vector<1x1x8xf32> to vector<1x8xf32>
    %48 = vector.broadcast %47 : vector<1x8xf32> to vector<8x8xf32>
    %49 = arith.addf %45, %48 : vector<8x8xf32>
    %c7 = arith.constant 7 : index
    %c0_43 = arith.constant 0 : index
    %c0_44 = arith.constant 0 : index
    %50 = vector.load %arg2[%c7, %c0_43, %c0_44] : memref<16x32x8xf32, #tpu.memory_space<vmem>>, vector<1x32x8xf32>
    %51 = vector.shape_cast %50 : vector<1x32x8xf32> to vector<32x8xf32>
    %cst_45 = arith.constant dense<0.000000e+00> : vector<8x8xf32>
    %52 = tpu.matmul %0, %51, %cst_45 {dimension_numbers = #tpu.dot_dimension_numbers<[1], [0], [0], [1], [0, 0, 1, 1], [], []>} : vector<8x32xf32>, vector<32x8xf32>, vector<8x8xf32> -> vector<8x8xf32>
    %c7_46 = arith.constant 7 : index
    %c0_47 = arith.constant 0 : index
    %c0_48 = arith.constant 0 : index
    %53 = vector.load %arg3[%c7_46, %c0_47, %c0_48] : memref<16x1x8xf32, #tpu.memory_space<vmem>>, vector<1x1x8xf32>
    %54 = vector.shape_cast %53 : vector<1x1x8xf32> to vector<1x8xf32>
    %55 = vector.broadcast %54 : vector<1x8xf32> to vector<8x8xf32>
    %56 = arith.addf %52, %55 : vector<8x8xf32>
    %c8 = arith.constant 8 : index
    %c0_49 = arith.constant 0 : index
    %c0_50 = arith.constant 0 : index
    %57 = vector.load %arg2[%c8, %c0_49, %c0_50] : memref<16x32x8xf32, #tpu.memory_space<vmem>>, vector<1x32x8xf32>
    %58 = vector.shape_cast %57 : vector<1x32x8xf32> to vector<32x8xf32>
    %cst_51 = arith.constant dense<0.000000e+00> : vector<8x8xf32>
    %59 = tpu.matmul %0, %58, %cst_51 {dimension_numbers = #tpu.dot_dimension_numbers<[1], [0], [0], [1], [0, 0, 1, 1], [], []>} : vector<8x32xf32>, vector<32x8xf32>, vector<8x8xf32> -> vector<8x8xf32>
    %c8_52 = arith.constant 8 : index
    %c0_53 = arith.constant 0 : index
    %c0_54 = arith.constant 0 : index
    %60 = vector.load %arg3[%c8_52, %c0_53, %c0_54] : memref<16x1x8xf32, #tpu.memory_space<vmem>>, vector<1x1x8xf32>
    %61 = vector.shape_cast %60 : vector<1x1x8xf32> to vector<1x8xf32>
    %62 = vector.broadcast %61 : vector<1x8xf32> to vector<8x8xf32>
    %63 = arith.addf %59, %62 : vector<8x8xf32>
    %c9 = arith.constant 9 : index
    %c0_55 = arith.constant 0 : index
    %c0_56 = arith.constant 0 : index
    %64 = vector.load %arg2[%c9, %c0_55, %c0_56] : memref<16x32x8xf32, #tpu.memory_space<vmem>>, vector<1x32x8xf32>
    %65 = vector.shape_cast %64 : vector<1x32x8xf32> to vector<32x8xf32>
    %cst_57 = arith.constant dense<0.000000e+00> : vector<8x8xf32>
    %66 = tpu.matmul %0, %65, %cst_57 {dimension_numbers = #tpu.dot_dimension_numbers<[1], [0], [0], [1], [0, 0, 1, 1], [], []>} : vector<8x32xf32>, vector<32x8xf32>, vector<8x8xf32> -> vector<8x8xf32>
    %c9_58 = arith.constant 9 : index
    %c0_59 = arith.constant 0 : index
    %c0_60 = arith.constant 0 : index
    %67 = vector.load %arg3[%c9_58, %c0_59, %c0_60] : memref<16x1x8xf32, #tpu.memory_space<vmem>>, vector<1x1x8xf32>
    %68 = vector.shape_cast %67 : vector<1x1x8xf32> to vector<1x8xf32>
    %69 = vector.broadcast %68 : vector<1x8xf32> to vector<8x8xf32>
    %70 = arith.addf %66, %69 : vector<8x8xf32>
    %c10 = arith.constant 10 : index
    %c0_61 = arith.constant 0 : index
    %c0_62 = arith.constant 0 : index
    %71 = vector.load %arg2[%c10, %c0_61, %c0_62] : memref<16x32x8xf32, #tpu.memory_space<vmem>>, vector<1x32x8xf32>
    %72 = vector.shape_cast %71 : vector<1x32x8xf32> to vector<32x8xf32>
    %cst_63 = arith.constant dense<0.000000e+00> : vector<8x8xf32>
    %73 = tpu.matmul %0, %72, %cst_63 {dimension_numbers = #tpu.dot_dimension_numbers<[1], [0], [0], [1], [0, 0, 1, 1], [], []>} : vector<8x32xf32>, vector<32x8xf32>, vector<8x8xf32> -> vector<8x8xf32>
    %c10_64 = arith.constant 10 : index
    %c0_65 = arith.constant 0 : index
    %c0_66 = arith.constant 0 : index
    %74 = vector.load %arg3[%c10_64, %c0_65, %c0_66] : memref<16x1x8xf32, #tpu.memory_space<vmem>>, vector<1x1x8xf32>
    %75 = vector.shape_cast %74 : vector<1x1x8xf32> to vector<1x8xf32>
    %76 = vector.broadcast %75 : vector<1x8xf32> to vector<8x8xf32>
    %77 = arith.addf %73, %76 : vector<8x8xf32>
    %c11 = arith.constant 11 : index
    %c0_67 = arith.constant 0 : index
    %c0_68 = arith.constant 0 : index
    %78 = vector.load %arg2[%c11, %c0_67, %c0_68] : memref<16x32x8xf32, #tpu.memory_space<vmem>>, vector<1x32x8xf32>
    %79 = vector.shape_cast %78 : vector<1x32x8xf32> to vector<32x8xf32>
    %cst_69 = arith.constant dense<0.000000e+00> : vector<8x8xf32>
    %80 = tpu.matmul %0, %79, %cst_69 {dimension_numbers = #tpu.dot_dimension_numbers<[1], [0], [0], [1], [0, 0, 1, 1], [], []>} : vector<8x32xf32>, vector<32x8xf32>, vector<8x8xf32> -> vector<8x8xf32>
    %c11_70 = arith.constant 11 : index
    %c0_71 = arith.constant 0 : index
    %c0_72 = arith.constant 0 : index
    %81 = vector.load %arg3[%c11_70, %c0_71, %c0_72] : memref<16x1x8xf32, #tpu.memory_space<vmem>>, vector<1x1x8xf32>
    %82 = vector.shape_cast %81 : vector<1x1x8xf32> to vector<1x8xf32>
    %83 = vector.broadcast %82 : vector<1x8xf32> to vector<8x8xf32>
    %84 = arith.addf %80, %83 : vector<8x8xf32>
    %c12 = arith.constant 12 : index
    %c0_73 = arith.constant 0 : index
    %c0_74 = arith.constant 0 : index
    %85 = vector.load %arg2[%c12, %c0_73, %c0_74] : memref<16x32x8xf32, #tpu.memory_space<vmem>>, vector<1x32x8xf32>
    %86 = vector.shape_cast %85 : vector<1x32x8xf32> to vector<32x8xf32>
    %cst_75 = arith.constant dense<0.000000e+00> : vector<8x8xf32>
    %87 = tpu.matmul %0, %86, %cst_75 {dimension_numbers = #tpu.dot_dimension_numbers<[1], [0], [0], [1], [0, 0, 1, 1], [], []>} : vector<8x32xf32>, vector<32x8xf32>, vector<8x8xf32> -> vector<8x8xf32>
    %c12_76 = arith.constant 12 : index
    %c0_77 = arith.constant 0 : index
    %c0_78 = arith.constant 0 : index
    %88 = vector.load %arg3[%c12_76, %c0_77, %c0_78] : memref<16x1x8xf32, #tpu.memory_space<vmem>>, vector<1x1x8xf32>
    %89 = vector.shape_cast %88 : vector<1x1x8xf32> to vector<1x8xf32>
    %90 = vector.broadcast %89 : vector<1x8xf32> to vector<8x8xf32>
    %91 = arith.addf %87, %90 : vector<8x8xf32>
    %c13 = arith.constant 13 : index
    %c0_79 = arith.constant 0 : index
    %c0_80 = arith.constant 0 : index
    %92 = vector.load %arg2[%c13, %c0_79, %c0_80] : memref<16x32x8xf32, #tpu.memory_space<vmem>>, vector<1x32x8xf32>
    %93 = vector.shape_cast %92 : vector<1x32x8xf32> to vector<32x8xf32>
    %cst_81 = arith.constant dense<0.000000e+00> : vector<8x8xf32>
    %94 = tpu.matmul %0, %93, %cst_81 {dimension_numbers = #tpu.dot_dimension_numbers<[1], [0], [0], [1], [0, 0, 1, 1], [], []>} : vector<8x32xf32>, vector<32x8xf32>, vector<8x8xf32> -> vector<8x8xf32>
    %c13_82 = arith.constant 13 : index
    %c0_83 = arith.constant 0 : index
    %c0_84 = arith.constant 0 : index
    %95 = vector.load %arg3[%c13_82, %c0_83, %c0_84] : memref<16x1x8xf32, #tpu.memory_space<vmem>>, vector<1x1x8xf32>
    %96 = vector.shape_cast %95 : vector<1x1x8xf32> to vector<1x8xf32>
    %97 = vector.broadcast %96 : vector<1x8xf32> to vector<8x8xf32>
    %98 = arith.addf %94, %97 : vector<8x8xf32>
    %c14 = arith.constant 14 : index
    %c0_85 = arith.constant 0 : index
    %c0_86 = arith.constant 0 : index
    %99 = vector.load %arg2[%c14, %c0_85, %c0_86] : memref<16x32x8xf32, #tpu.memory_space<vmem>>, vector<1x32x8xf32>
    %100 = vector.shape_cast %99 : vector<1x32x8xf32> to vector<32x8xf32>
    %cst_87 = arith.constant dense<0.000000e+00> : vector<8x8xf32>
    %101 = tpu.matmul %0, %100, %cst_87 {dimension_numbers = #tpu.dot_dimension_numbers<[1], [0], [0], [1], [0, 0, 1, 1], [], []>} : vector<8x32xf32>, vector<32x8xf32>, vector<8x8xf32> -> vector<8x8xf32>
    %c14_88 = arith.constant 14 : index
    %c0_89 = arith.constant 0 : index
    %c0_90 = arith.constant 0 : index
    %102 = vector.load %arg3[%c14_88, %c0_89, %c0_90] : memref<16x1x8xf32, #tpu.memory_space<vmem>>, vector<1x1x8xf32>
    %103 = vector.shape_cast %102 : vector<1x1x8xf32> to vector<1x8xf32>
    %104 = vector.broadcast %103 : vector<1x8xf32> to vector<8x8xf32>
    %105 = arith.addf %101, %104 : vector<8x8xf32>
    %c15 = arith.constant 15 : index
    %c0_91 = arith.constant 0 : index
    %c0_92 = arith.constant 0 : index
    %106 = vector.load %arg2[%c15, %c0_91, %c0_92] : memref<16x32x8xf32, #tpu.memory_space<vmem>>, vector<1x32x8xf32>
    %107 = vector.shape_cast %106 : vector<1x32x8xf32> to vector<32x8xf32>
    %cst_93 = arith.constant dense<0.000000e+00> : vector<8x8xf32>
    %108 = tpu.matmul %0, %107, %cst_93 {dimension_numbers = #tpu.dot_dimension_numbers<[1], [0], [0], [1], [0, 0, 1, 1], [], []>} : vector<8x32xf32>, vector<32x8xf32>, vector<8x8xf32> -> vector<8x8xf32>
    %c15_94 = arith.constant 15 : index
    %c0_95 = arith.constant 0 : index
    %c0_96 = arith.constant 0 : index
    %109 = vector.load %arg3[%c15_94, %c0_95, %c0_96] : memref<16x1x8xf32, #tpu.memory_space<vmem>>, vector<1x1x8xf32>
    %110 = vector.shape_cast %109 : vector<1x1x8xf32> to vector<1x8xf32>
    %111 = vector.broadcast %110 : vector<1x8xf32> to vector<8x8xf32>
    %112 = arith.addf %108, %111 : vector<8x8xf32>
    %113 = arith.maximumf %7, %14 : vector<8x8xf32>
    %114 = arith.maximumf %113, %21 : vector<8x8xf32>
    %115 = arith.maximumf %114, %28 : vector<8x8xf32>
    %116 = arith.maximumf %115, %35 : vector<8x8xf32>
    %117 = arith.maximumf %116, %42 : vector<8x8xf32>
    %118 = arith.maximumf %117, %49 : vector<8x8xf32>
    %119 = arith.maximumf %118, %56 : vector<8x8xf32>
    %120 = arith.maximumf %119, %63 : vector<8x8xf32>
    %121 = arith.maximumf %120, %70 : vector<8x8xf32>
    %122 = arith.maximumf %121, %77 : vector<8x8xf32>
    %123 = arith.maximumf %122, %84 : vector<8x8xf32>
    %124 = arith.maximumf %123, %91 : vector<8x8xf32>
    %125 = arith.maximumf %124, %98 : vector<8x8xf32>
    %126 = arith.maximumf %125, %105 : vector<8x8xf32>
    %127 = arith.maximumf %126, %112 : vector<8x8xf32>
    %128 = arith.subf %7, %127 : vector<8x8xf32>
    %129 = math.exp %128 : vector<8x8xf32>
    %130 = arith.subf %14, %127 : vector<8x8xf32>
    %131 = math.exp %130 : vector<8x8xf32>
    %132 = arith.addf %129, %131 : vector<8x8xf32>
    %133 = arith.subf %21, %127 : vector<8x8xf32>
    %134 = math.exp %133 : vector<8x8xf32>
    %135 = arith.addf %132, %134 : vector<8x8xf32>
    %136 = arith.subf %28, %127 : vector<8x8xf32>
    %137 = math.exp %136 : vector<8x8xf32>
    %138 = arith.addf %135, %137 : vector<8x8xf32>
    %139 = arith.subf %35, %127 : vector<8x8xf32>
    %140 = math.exp %139 : vector<8x8xf32>
    %141 = arith.addf %138, %140 : vector<8x8xf32>
    %142 = arith.subf %42, %127 : vector<8x8xf32>
    %143 = math.exp %142 : vector<8x8xf32>
    %144 = arith.addf %141, %143 : vector<8x8xf32>
    %145 = arith.subf %49, %127 : vector<8x8xf32>
    %146 = math.exp %145 : vector<8x8xf32>
    %147 = arith.addf %144, %146 : vector<8x8xf32>
    %148 = arith.subf %56, %127 : vector<8x8xf32>
    %149 = math.exp %148 : vector<8x8xf32>
    %150 = arith.addf %147, %149 : vector<8x8xf32>
    %151 = arith.subf %63, %127 : vector<8x8xf32>
    %152 = math.exp %151 : vector<8x8xf32>
    %153 = arith.addf %150, %152 : vector<8x8xf32>
    %154 = arith.subf %70, %127 : vector<8x8xf32>
    %155 = math.exp %154 : vector<8x8xf32>
    %156 = arith.addf %153, %155 : vector<8x8xf32>
    %157 = arith.subf %77, %127 : vector<8x8xf32>
    %158 = math.exp %157 : vector<8x8xf32>
    %159 = arith.addf %156, %158 : vector<8x8xf32>
    %160 = arith.subf %84, %127 : vector<8x8xf32>
    %161 = math.exp %160 : vector<8x8xf32>
    %162 = arith.addf %159, %161 : vector<8x8xf32>
    %163 = arith.subf %91, %127 : vector<8x8xf32>
    %164 = math.exp %163 : vector<8x8xf32>
    %165 = arith.addf %162, %164 : vector<8x8xf32>
    %166 = arith.subf %98, %127 : vector<8x8xf32>
    %167 = math.exp %166 : vector<8x8xf32>
    %168 = arith.addf %165, %167 : vector<8x8xf32>
    %169 = arith.subf %105, %127 : vector<8x8xf32>
    %170 = math.exp %169 : vector<8x8xf32>
    %171 = arith.addf %168, %170 : vector<8x8xf32>
    %172 = arith.subf %112, %127 : vector<8x8xf32>
    %173 = math.exp %172 : vector<8x8xf32>
    %174 = arith.addf %171, %173 : vector<8x8xf32>
    %175 = math.log %174 : vector<8x8xf32>
    %176 = arith.addf %127, %175 : vector<8x8xf32>
    %177 = arith.subf %7, %176 : vector<8x8xf32>
    %178 = arith.subf %14, %176 : vector<8x8xf32>
    %179 = arith.subf %21, %176 : vector<8x8xf32>
    %180 = arith.subf %28, %176 : vector<8x8xf32>
    %181 = arith.subf %35, %176 : vector<8x8xf32>
    %182 = arith.subf %42, %176 : vector<8x8xf32>
    %183 = arith.subf %49, %176 : vector<8x8xf32>
    %184 = arith.subf %56, %176 : vector<8x8xf32>
    %185 = arith.subf %63, %176 : vector<8x8xf32>
    %186 = arith.subf %70, %176 : vector<8x8xf32>
    %187 = arith.subf %77, %176 : vector<8x8xf32>
    %188 = arith.subf %84, %176 : vector<8x8xf32>
    %189 = arith.subf %91, %176 : vector<8x8xf32>
    %190 = arith.subf %98, %176 : vector<8x8xf32>
    %191 = arith.subf %105, %176 : vector<8x8xf32>
    %192 = arith.subf %112, %176 : vector<8x8xf32>
    %c0_97 = arith.constant 0 : index
    %c0_98 = arith.constant 0 : index
    %c0_99 = arith.constant 0 : index
    %193 = vector.load %arg4[%c0_97, %c0_98, %c0_99] : memref<16x8x8xf32, #tpu.memory_space<vmem>>, vector<1x8x8xf32>
    %194 = vector.shape_cast %193 : vector<1x8x8xf32> to vector<8x8xf32>
    %195 = vector.shape_cast %177 : vector<8x8xf32> to vector<1x8x8xf32>
    tpu.vector_store %arg4[%c0_97, %c0_98, %c0_99], %195 {strides = array<i32>} : memref<16x8x8xf32, #tpu.memory_space<vmem>>, vector<1x8x8xf32>,
    %c1_100 = arith.constant 1 : index
    %c0_101 = arith.constant 0 : index
    %c0_102 = arith.constant 0 : index
    %196 = vector.load %arg4[%c1_100, %c0_101, %c0_102] : memref<16x8x8xf32, #tpu.memory_space<vmem>>, vector<1x8x8xf32>
    %197 = vector.shape_cast %196 : vector<1x8x8xf32> to vector<8x8xf32>
    %198 = vector.shape_cast %178 : vector<8x8xf32> to vector<1x8x8xf32>
    tpu.vector_store %arg4[%c1_100, %c0_101, %c0_102], %198 {strides = array<i32>} : memref<16x8x8xf32, #tpu.memory_space<vmem>>, vector<1x8x8xf32>,
    %c2_103 = arith.constant 2 : index
    %c0_104 = arith.constant 0 : index
    %c0_105 = arith.constant 0 : index
    %199 = vector.load %arg4[%c2_103, %c0_104, %c0_105] : memref<16x8x8xf32, #tpu.memory_space<vmem>>, vector<1x8x8xf32>
    %200 = vector.shape_cast %199 : vector<1x8x8xf32> to vector<8x8xf32>
    %201 = vector.shape_cast %179 : vector<8x8xf32> to vector<1x8x8xf32>
    tpu.vector_store %arg4[%c2_103, %c0_104, %c0_105], %201 {strides = array<i32>} : memref<16x8x8xf32, #tpu.memory_space<vmem>>, vector<1x8x8xf32>,
    %c3_106 = arith.constant 3 : index
    %c0_107 = arith.constant 0 : index
    %c0_108 = arith.constant 0 : index
    %202 = vector.load %arg4[%c3_106, %c0_107, %c0_108] : memref<16x8x8xf32, #tpu.memory_space<vmem>>, vector<1x8x8xf32>
    %203 = vector.shape_cast %202 : vector<1x8x8xf32> to vector<8x8xf32>
    %204 = vector.shape_cast %180 : vector<8x8xf32> to vector<1x8x8xf32>
    tpu.vector_store %arg4[%c3_106, %c0_107, %c0_108], %204 {strides = array<i32>} : memref<16x8x8xf32, #tpu.memory_space<vmem>>, vector<1x8x8xf32>,
    %c4_109 = arith.constant 4 : index
    %c0_110 = arith.constant 0 : index
    %c0_111 = arith.constant 0 : index
    %205 = vector.load %arg4[%c4_109, %c0_110, %c0_111] : memref<16x8x8xf32, #tpu.memory_space<vmem>>, vector<1x8x8xf32>
    %206 = vector.shape_cast %205 : vector<1x8x8xf32> to vector<8x8xf32>
    %207 = vector.shape_cast %181 : vector<8x8xf32> to vector<1x8x8xf32>
    tpu.vector_store %arg4[%c4_109, %c0_110, %c0_111], %207 {strides = array<i32>} : memref<16x8x8xf32, #tpu.memory_space<vmem>>, vector<1x8x8xf32>,
    %c5_112 = arith.constant 5 : index
    %c0_113 = arith.constant 0 : index
    %c0_114 = arith.constant 0 : index
    %208 = vector.load %arg4[%c5_112, %c0_113, %c0_114] : memref<16x8x8xf32, #tpu.memory_space<vmem>>, vector<1x8x8xf32>
    %209 = vector.shape_cast %208 : vector<1x8x8xf32> to vector<8x8xf32>
    %210 = vector.shape_cast %182 : vector<8x8xf32> to vector<1x8x8xf32>
    tpu.vector_store %arg4[%c5_112, %c0_113, %c0_114], %210 {strides = array<i32>} : memref<16x8x8xf32, #tpu.memory_space<vmem>>, vector<1x8x8xf32>,
    %c6_115 = arith.constant 6 : index
    %c0_116 = arith.constant 0 : index
    %c0_117 = arith.constant 0 : index
    %211 = vector.load %arg4[%c6_115, %c0_116, %c0_117] : memref<16x8x8xf32, #tpu.memory_space<vmem>>, vector<1x8x8xf32>
    %212 = vector.shape_cast %211 : vector<1x8x8xf32> to vector<8x8xf32>
    %213 = vector.shape_cast %183 : vector<8x8xf32> to vector<1x8x8xf32>
    tpu.vector_store %arg4[%c6_115, %c0_116, %c0_117], %213 {strides = array<i32>} : memref<16x8x8xf32, #tpu.memory_space<vmem>>, vector<1x8x8xf32>,
    %c7_118 = arith.constant 7 : index
    %c0_119 = arith.constant 0 : index
    %c0_120 = arith.constant 0 : index
    %214 = vector.load %arg4[%c7_118, %c0_119, %c0_120] : memref<16x8x8xf32, #tpu.memory_space<vmem>>, vector<1x8x8xf32>
    %215 = vector.shape_cast %214 : vector<1x8x8xf32> to vector<8x8xf32>
    %216 = vector.shape_cast %184 : vector<8x8xf32> to vector<1x8x8xf32>
    tpu.vector_store %arg4[%c7_118, %c0_119, %c0_120], %216 {strides = array<i32>} : memref<16x8x8xf32, #tpu.memory_space<vmem>>, vector<1x8x8xf32>,
    %c8_121 = arith.constant 8 : index
    %c0_122 = arith.constant 0 : index
    %c0_123 = arith.constant 0 : index
    %217 = vector.load %arg4[%c8_121, %c0_122, %c0_123] : memref<16x8x8xf32, #tpu.memory_space<vmem>>, vector<1x8x8xf32>
    %218 = vector.shape_cast %217 : vector<1x8x8xf32> to vector<8x8xf32>
    %219 = vector.shape_cast %185 : vector<8x8xf32> to vector<1x8x8xf32>
    tpu.vector_store %arg4[%c8_121, %c0_122, %c0_123], %219 {strides = array<i32>} : memref<16x8x8xf32, #tpu.memory_space<vmem>>, vector<1x8x8xf32>,
    %c9_124 = arith.constant 9 : index
    %c0_125 = arith.constant 0 : index
    %c0_126 = arith.constant 0 : index
    %220 = vector.load %arg4[%c9_124, %c0_125, %c0_126] : memref<16x8x8xf32, #tpu.memory_space<vmem>>, vector<1x8x8xf32>
    %221 = vector.shape_cast %220 : vector<1x8x8xf32> to vector<8x8xf32>
    %222 = vector.shape_cast %186 : vector<8x8xf32> to vector<1x8x8xf32>
    tpu.vector_store %arg4[%c9_124, %c0_125, %c0_126], %222 {strides = array<i32>} : memref<16x8x8xf32, #tpu.memory_space<vmem>>, vector<1x8x8xf32>,
    %c10_127 = arith.constant 10 : index
    %c0_128 = arith.constant 0 : index
    %c0_129 = arith.constant 0 : index
    %223 = vector.load %arg4[%c10_127, %c0_128, %c0_129] : memref<16x8x8xf32, #tpu.memory_space<vmem>>, vector<1x8x8xf32>
    %224 = vector.shape_cast %223 : vector<1x8x8xf32> to vector<8x8xf32>
    %225 = vector.shape_cast %187 : vector<8x8xf32> to vector<1x8x8xf32>
    tpu.vector_store %arg4[%c10_127, %c0_128, %c0_129], %225 {strides = array<i32>} : memref<16x8x8xf32, #tpu.memory_space<vmem>>, vector<1x8x8xf32>,
    %c11_130 = arith.constant 11 : index
    %c0_131 = arith.constant 0 : index
    %c0_132 = arith.constant 0 : index
    %226 = vector.load %arg4[%c11_130, %c0_131, %c0_132] : memref<16x8x8xf32, #tpu.memory_space<vmem>>, vector<1x8x8xf32>
    %227 = vector.shape_cast %226 : vector<1x8x8xf32> to vector<8x8xf32>
    %228 = vector.shape_cast %188 : vector<8x8xf32> to vector<1x8x8xf32>
    tpu.vector_store %arg4[%c11_130, %c0_131, %c0_132], %228 {strides = array<i32>} : memref<16x8x8xf32, #tpu.memory_space<vmem>>, vector<1x8x8xf32>,
    %c12_133 = arith.constant 12 : index
    %c0_134 = arith.constant 0 : index
    %c0_135 = arith.constant 0 : index
    %229 = vector.load %arg4[%c12_133, %c0_134, %c0_135] : memref<16x8x8xf32, #tpu.memory_space<vmem>>, vector<1x8x8xf32>
    %230 = vector.shape_cast %229 : vector<1x8x8xf32> to vector<8x8xf32>
    %231 = vector.shape_cast %189 : vector<8x8xf32> to vector<1x8x8xf32>
    tpu.vector_store %arg4[%c12_133, %c0_134, %c0_135], %231 {strides = array<i32>} : memref<16x8x8xf32, #tpu.memory_space<vmem>>, vector<1x8x8xf32>,
    %c13_136 = arith.constant 13 : index
    %c0_137 = arith.constant 0 : index
    %c0_138 = arith.constant 0 : index
    %232 = vector.load %arg4[%c13_136, %c0_137, %c0_138] : memref<16x8x8xf32, #tpu.memory_space<vmem>>, vector<1x8x8xf32>
    %233 = vector.shape_cast %232 : vector<1x8x8xf32> to vector<8x8xf32>
    %234 = vector.shape_cast %190 : vector<8x8xf32> to vector<1x8x8xf32>
    tpu.vector_store %arg4[%c13_136, %c0_137, %c0_138], %234 {strides = array<i32>} : memref<16x8x8xf32, #tpu.memory_space<vmem>>, vector<1x8x8xf32>,
    %c14_139 = arith.constant 14 : index
    %c0_140 = arith.constant 0 : index
    %c0_141 = arith.constant 0 : index
    %235 = vector.load %arg4[%c14_139, %c0_140, %c0_141] : memref<16x8x8xf32, #tpu.memory_space<vmem>>, vector<1x8x8xf32>
    %236 = vector.shape_cast %235 : vector<1x8x8xf32> to vector<8x8xf32>
    %237 = vector.shape_cast %191 : vector<8x8xf32> to vector<1x8x8xf32>
    tpu.vector_store %arg4[%c14_139, %c0_140, %c0_141], %237 {strides = array<i32>} : memref<16x8x8xf32, #tpu.memory_space<vmem>>, vector<1x8x8xf32>,
    %c15_142 = arith.constant 15 : index
    %c0_143 = arith.constant 0 : index
    %c0_144 = arith.constant 0 : index
    %238 = vector.load %arg4[%c15_142, %c0_143, %c0_144] : memref<16x8x8xf32, #tpu.memory_space<vmem>>, vector<1x8x8xf32>
    %239 = vector.shape_cast %238 : vector<1x8x8xf32> to vector<8x8xf32>
    %240 = vector.shape_cast %192 : vector<8x8xf32> to vector<1x8x8xf32>
    tpu.vector_store %arg4[%c15_142, %c0_143, %c0_144], %240 {strides = array<i32>} : memref<16x8x8xf32, #tpu.memory_space<vmem>>, vector<1x8x8xf32>,
    return
  }
  func.func @transform_0(%arg0: i32) -> (i32, i32) {
    %c0_i32 = arith.constant 0 : i32
    %c0_i32_0 = arith.constant 0 : i32
    %c0_i32_1 = arith.constant 0 : i32
    return %c0_i32, %c0_i32_0 : i32, i32
  }
  func.func @transform_1(%arg0: i32) -> (i32, i32, i32) {
    %c0_i32 = arith.constant 0 : i32
    %c0_i32_0 = arith.constant 0 : i32
    %c0_i32_1 = arith.constant 0 : i32
    return %c0_i32, %c0_i32_0, %arg0 : i32, i32, i32
  }
  func.func @transform_2(%arg0: i32) -> (i32, i32, i32) {
    %c0_i32 = arith.constant 0 : i32
    %c0_i32_0 = arith.constant 0 : i32
    %c0_i32_1 = arith.constant 0 : i32
    return %c0_i32, %c0_i32_0, %arg0 : i32, i32, i32
  }
  func.func @transform_3(%arg0: i32) -> (i32, i32, i32) {
    %c0_i32 = arith.constant 0 : i32
    %c0_i32_0 = arith.constant 0 : i32
    %c0_i32_1 = arith.constant 0 : i32
    return %c0_i32, %c0_i32_0, %arg0 : i32, i32, i32
  }
}

</mosaic_0001>

<bundles_post_ra>
// kernel: redmulnet_decoder_forward.1
= control target key start
LH: loop header
LB: loop body
LE: loop exit
PB: predicated region body
PF: predicated region fallthrough
CT: control target
= control target key end

     0   :  { %v1989_v0 = vmov 0.0|0.0   ;;  %vm1990_vm0 = vmmov 0   ;;  %v1991_v8 = vmov 0.0   ;;  %vm26_vm1 = vcmask 261120   ;;  %s2516_s1 = inlined_call_operand.vmem [shape: f32[16,32,8], index: 1, kind: input, shape index: {}]   ;;  %s2517_s0 = inlined_call_operand.vmem [shape: f32[8,32], index: 0, kind: input, shape index: {}]   ;;  %s2518_s2 = inlined_call_operand.vmem [shape: f32[16,1,8], index: 2, kind: input, shape index: {}]   ;;  %s2519_s3 = inlined_call_operand.vmem [shape: f32[16,8,8], index: 3, kind: output, shape index: {}]  }
   0x1   :  { %1856 = vmatprep.subr.bf16.mxu0 %v1989_v0  ;;  %v15_v1 = vld [vmem:[%s2516_s1] sm:$0xff]  ;;  %v16_v2 = vld [vmem:[%s2516_s1 + $0x8] sm:$0xff]  ;;  %1862 = vmatprep.subr.bf16.mxu1 %v1989_v0  ;;  %v17_v6 = vld [vmem:[%s2516_s1 + $0x10] sm:$0xff]  ;;  %vm1442_vm2 = vcmask 64512  }
   0x2   :  { %v1480_v3 = vld [vmem:[%s2516_s1 + $0x20] sm:$0xff]  ;;  %v1857_v4 = vpack.c.bf16 %v16_v2, %v15_v1  ;;  %v1481_v5 = vld [vmem:[%s2516_s1 + $0x28] sm:$0xff]  ;;  %v18_v7 = vld [vmem:[%s2516_s1 + $0x18] sm:$0xff]  ;;  %1688 = vmatprep.mubr.msk.f32.mxu0 %vm1990_vm0, %v1991_v8  ;;  %1699 = vmatprep.mubr.msk.f32.mxu1 %vm1990_vm0, %v1991_v8 }
   0x3   :  { %v1863_v9 = vpack.c.bf16 %v1481_v5, %v1480_v3  ;;  %v1482_v10 = vld [vmem:[%s2516_s1 + $0x30] sm:$0xff]  ;;  %v1483_v11 = vld [vmem:[%s2516_s1 + $0x38] sm:$0xff]  ;;  %v1860_v12 = vpack.c.bf16 %v18_v7, %v17_v6  ;;  %v1487_v14 = vld [vmem:[%s2516_s1 + $0x40] sm:$0xff] }
   0x4   :  { %1858 = vmatpush3.bf16.msra.mxu0 %v1857_v4  ;;  %v1866_v13 = vpack.c.bf16 %v1483_v11, %v1482_v10  ;;  %v1488_v15 = vld [vmem:[%s2516_s1 + $0x48] sm:$0xff]  ;;  %v1494_v16 = vld [vmem:[%s2516_s1 + $0x60] sm:$0xff]  ;;  %v1489_v21 = vld [vmem:[%s2516_s1 + $0x50] sm:$0xff] }
   0x5   :  { %1864 = vmatpush3.bf16.msra.mxu1 %v1863_v9  ;;  %1859 = vmatprep.subr.bf16.mxu0 %v1989_v0  ;;  %v1495_v17 = vld [vmem:[%s2516_s1 + $0x68] sm:$0xff]  ;;  %v2059_v18 = vld [vmem:[%s2517_s0] sm:$0xff]  ;;  %v1869_v19 = vpack.c.bf16 %v1488_v15, %v1487_v14  ;;  %v1490_v22 = vld [vmem:[%s2516_s1 + $0x58] sm:$0xff] }
   0x6   :  { %1865 = vmatprep.subr.bf16.mxu1 %v1989_v0  ;;  %v1875_v20 = vpack.c.bf16 %v1495_v17, %v1494_v16  ;;  %v1496_v23 = vld [vmem:[%s2516_s1 + $0x70] sm:$0xff]  ;;  %v1497_v24 = vld [vmem:[%s2516_s1 + $0x78] sm:$0xff]  ;;  %v1872_v25 = vpack.c.bf16 %v1490_v22, %v1489_v21  ;;  %v1501_v27 = vld [vmem:[%s2516_s1 + $0x80] sm:$0xff] }
   0x7   :  { %v1878_v26 = vpack.c.bf16 %v1497_v24, %v1496_v23  ;;  %v1502_v28 = vld [vmem:[%s2516_s1 + $0x88] sm:$0xff]  ;;  %v1508_v29 = vld [vmem:[%s2516_s1 + $0xa0] sm:$0xff]  ;;  %v1503_v33 = vld [vmem:[%s2516_s1 + $0x90] sm:$0xff] }
   0x8   :  { %1861 = vmatpush3.bf16.msra.mxu0 %v1860_v12  ;;  %v1509_v30 = vld [vmem:[%s2516_s1 + $0xa8] sm:$0xff]  ;;  %v1881_v31 = vpack.c.bf16 %v1502_v28, %v1501_v27  ;;  %v1504_v34 = vld [vmem:[%s2516_s1 + $0x98] sm:$0xff]  ;;  %v1510_v35 = vld [vmem:[%s2516_s1 + $0xb0] sm:$0xff] }
   0x9   :  { %1867 = vmatpush3.bf16.msra.mxu1 %v1866_v13  ;;  %1868 = vmatprep.subr.bf16.mxu0 %v1989_v0  ;;  %v1887_v32 = vpack.c.bf16 %v1509_v30, %v1508_v29  ;;  %v1511_v36 = vld [vmem:[%s2516_s1 + $0xb8] sm:$0xff]  ;;  %v1884_v37 = vpack.c.bf16 %v1504_v34, %v1503_v33  ;;  %v1515_v39 = vld [vmem:[%s2516_s1 + $0xc0] sm:$0xff]  ;;  %v1516_v40 = vld [vmem:[%s2516_s1 + $0xc8] sm:$0xff] }
   0xa   :  { %1874 = vmatprep.subr.bf16.mxu1 %v1989_v0  ;;  %v1890_v38 = vpack.c.bf16 %v1511_v36, %v1510_v35  ;;  %v1522_v41 = vld [vmem:[%s2516_s1 + $0xe0] sm:$0xff]  ;;  %v1523_v42 = vld [vmem:[%s2516_s1 + $0xe8] sm:$0xff]  ;;  %v1893_v43 = vpack.c.bf16 %v1516_v40, %v1515_v39  ;;  %v1517_v45 = vld [vmem:[%s2516_s1 + $0xd0] sm:$0xff] }
   0xb   :  { %1689 = vmatmul.mubr.msk.f32.vlgmr.msra.gmra.mrb[0].mxu0 %vm26_vm1, %v2059_v18  ;;  %v1899_v44 = vpack.c.bf16 %v1523_v42, %v1522_v41  ;;  %v1518_v46 = vld [vmem:[%s2516_s1 + $0xd8] sm:$0xff]  ;;  %v1524_v47 = vld [vmem:[%s2516_s1 + $0xf0] sm:$0xff]  ;;  %v1529_v51 = vld [vmem:[%s2516_s1 + $0x100] sm:$0xff] }
   0xc   :  { %1700 = vmatmul.mubr.msk.f32.vlgmr.msra.gmra.mrb[0].mxu1 %vm26_vm1, %v2059_v18  ;;  %1870 = vmatpush3.bf16.msra.mxu0 %v1869_v19  ;;  %v1525_v48 = vld [vmem:[%s2516_s1 + $0xf8] sm:$0xff]  ;;  %v1896_v49 = vpack.c.bf16 %v1518_v46, %v1517_v45  ;;  %v1530_v52 = vld [vmem:[%s2516_s1 + $0x108] sm:$0xff]  ;;  %v1536_v53 = vld [vmem:[%s2516_s1 + $0x120] sm:$0xff] }
   0xd   :  { %1876 = vmatpush3.bf16.msra.mxu1 %v1875_v20  ;;  %1871 = vmatprep.subr.bf16.mxu0 %v1989_v0  ;;  %v1902_v50 = vpack.c.bf16 %v1525_v48, %v1524_v47  ;;  %v1537_v54 = vld [vmem:[%s2516_s1 + $0x128] sm:$0xff]  ;;  %v1905_v55 = vpack.c.bf16 %v1530_v52, %v1529_v51  ;;  %v1531_v57 = vld [vmem:[%s2516_s1 + $0x110] sm:$0xff]  ;;  %v1532_v58 = vld [vmem:[%s2516_s1 + $0x118] sm:$0xff] }
   0xe   :  { %1877 = vmatprep.subr.bf16.mxu1 %v1989_v0  ;;  %1710 = vmatprep.mubr.msk.f32.mxu0 %vm1990_vm0, %v1991_v8  ;;  %v1911_v56 = vpack.c.bf16 %v1537_v54, %v1536_v53  ;;  %v1538_v59 = vld [vmem:[%s2516_s1 + $0x130] sm:$0xff]  ;;  %v1539_v60 = vld [vmem:[%s2516_s1 + $0x138] sm:$0xff]  ;;  %v1908_v61 = vpack.c.bf16 %v1532_v58, %v1531_v57  ;;  %v1543_v63 = vld [vmem:[%s2516_s1 + $0x140] sm:$0xff] }
   0xf   :  { %1721 = vmatprep.mubr.msk.f32.mxu1 %vm1990_vm0, %v1991_v8  ;;  %v1914_v62 = vpack.c.bf16 %v1539_v60, %v1538_v59  ;;  %v1544_v1 = vld [vmem:[%s2516_s1 + $0x148] sm:$0xff]  ;;  %v1550_v2 = vld [vmem:[%s2516_s1 + $0x160] sm:$0xff]  ;;  %v1545_v6 = vld [vmem:[%s2516_s1 + $0x150] sm:$0xff] }
  0x10   :  { %1873 = vmatpush3.bf16.msra.mxu0 %v1872_v25  ;;  %v1551_v3 = vld [vmem:[%s2516_s1 + $0x168] sm:$0xff]  ;;  %v1917_v4 = vpack.c.bf16 %v1544_v1, %v1543_v63  ;;  %v1546_v7 = vld [vmem:[%s2516_s1 + $0x158] sm:$0xff]  ;;  %v1552_v9 = vld [vmem:[%s2516_s1 + $0x170] sm:$0xff] }
  0x11   :  { %1879 = vmatpush3.bf16.msra.mxu1 %v1878_v26  ;;  %1880 = vmatprep.subr.bf16.mxu0 %v1989_v0  ;;  %v1923_v5 = vpack.c.bf16 %v1551_v3, %v1550_v2  ;;  %v1553_v10 = vld [vmem:[%s2516_s1 + $0x178] sm:$0xff]  ;;  %v1920_v11 = vpack.c.bf16 %v1546_v7, %v1545_v6  ;;  %v1557_v13 = vld [vmem:[%s2516_s1 + $0x180] sm:$0xff]  ;;  %v1558_v14 = vld [vmem:[%s2516_s1 + $0x188] sm:$0xff] }
  0x12   :  { %1886 = vmatprep.subr.bf16.mxu1 %v1989_v0  ;;  %v1926_v12 = vpack.c.bf16 %v1553_v10, %v1552_v9  ;;  %v1564_v15 = vld [vmem:[%s2516_s1 + $0x1a0] sm:$0xff]  ;;  %v1565_v16 = vld [vmem:[%s2516_s1 + $0x1a8] sm:$0xff]  ;;  %v1929_v17 = vpack.c.bf16 %v1558_v14, %v1557_v13  ;;  %v1559_v20 = vld [vmem:[%s2516_s1 + $0x190] sm:$0xff] }
  0x13   :  { %1711 = vmatmul.mubr.msk.f32.vlgmr.msra.gmra.mrb[2].mxu0 %vm26_vm1, %v2059_v18  ;;  %v1935_v19 = vpack.c.bf16 %v1565_v16, %v1564_v15  ;;  %v1560_v21 = vld [vmem:[%s2516_s1 + $0x198] sm:$0xff]  ;;  %v1566_v22 = vld [vmem:[%s2516_s1 + $0x1b0] sm:$0xff]  ;;  %v1571_v26 = vld [vmem:[%s2516_s1 + $0x1c0] sm:$0xff] }
  0x14   :  { %1882 = vmatpush3.bf16.msra.mxu0 %v1881_v31  ;;  %1722 = vmatmul.mubr.msk.f32.vlgmr.msra.gmra.mrb[2].mxu1 %vm26_vm1, %v2059_v18  ;;  %v1567_v23 = vld [vmem:[%s2516_s1 + $0x1b8] sm:$0xff]  ;;  %v1932_v24 = vpack.c.bf16 %v1560_v21, %v1559_v20  ;;  %v1572_v27 = vld [vmem:[%s2516_s1 + $0x1c8] sm:$0xff]  ;;  %v1578_v28 = vld [vmem:[%s2516_s1 + $0x1e0] sm:$0xff] }
  0x15   :  { %1888 = vmatpush3.bf16.msra.mxu1 %v1887_v32  ;;  %1883 = vmatprep.subr.bf16.mxu0 %v1989_v0  ;;  %v1938_v25 = vpack.c.bf16 %v1567_v23, %v1566_v22  ;;  %v1579_v29 = vld [vmem:[%s2516_s1 + $0x1e8] sm:$0xff]  ;;  %v1941_v30 = vpack.c.bf16 %v1572_v27, %v1571_v26  ;;  %v1573_v32 = vld [vmem:[%s2516_s1 + $0x1d0] sm:$0xff]  ;;  %v1574_v33 = vld [vmem:[%s2516_s1 + $0x1d8] sm:$0xff] }
  0x16   :  { %1889 = vmatprep.subr.bf16.mxu1 %v1989_v0  ;;  %1732 = vmatprep.mubr.msk.f32.mxu0 %vm1990_vm0, %v1991_v8  ;;  %v1947_v31 = vpack.c.bf16 %v1579_v29, %v1578_v28  ;;  %v1580_v34 = vld [vmem:[%s2516_s1 + $0x1f0] sm:$0xff]  ;;  %v1581_v35 = vld [vmem:[%s2516_s1 + $0x1f8] sm:$0xff]  ;;  %v1944_v36 = vpack.c.bf16 %v1574_v33, %v1573_v32  ;;  %v1485_v45 = vld [vmem:[%s2518_s2 + $0x1] ss:$0 sm:$0xff] }
  0x17   :  { %1743 = vmatprep.mubr.msk.f32.mxu1 %vm1990_vm0, %v1991_v8  ;;  %v1499_v53 = vld [vmem:[%s2518_s2 + $0x3] ss:$0 sm:$0xff]  ;;  %v1520_v2 = vld [vmem:[%s2518_s2 + $0x6] ss:$0 sm:$0xff]  ;;  %v1527_v6 = vld [vmem:[%s2518_s2 + $0x7] ss:$0 sm:$0xff] }
  0x18   :  { %1885 = vmatpush3.bf16.msra.mxu0 %v1884_v37  ;;  %v1950_v37 = vpack.c.bf16 %v1581_v35, %v1580_v34  ;;  %v1548_v20 = vld [vmem:[%s2518_s2 + $0xa] ss:$0 sm:$0xff]  ;;  %v1555_v28 = vld [vmem:[%s2518_s2 + $0xb] ss:$0 sm:$0xff] }
  0x19   :  { %1891 = vmatpush3.bf16.msra.mxu1 %v1890_v38  ;;  %1892 = vmatprep.subr.bf16.mxu0 %v1989_v0 }
  0x1a   :  { %1898 = vmatprep.subr.bf16.mxu1 %v1989_v0 }
  0x1b   :  { %1733 = vmatmul.mubr.msk.f32.vlgmr.msra.gmra.mrb[4].mxu0 %vm26_vm1, %v2059_v18 }
  0x1c   :  { %1894 = vmatpush3.bf16.msra.mxu0 %v1893_v43  ;;  %1744 = vmatmul.mubr.msk.f32.vlgmr.msra.gmra.mrb[4].mxu1 %vm26_vm1, %v2059_v18 }
  0x1d   :  { %1900 = vmatpush3.bf16.msra.mxu1 %v1899_v44  ;;  %1895 = vmatprep.subr.bf16.mxu0 %v1989_v0 }
  0x1e   :  { %1901 = vmatprep.subr.bf16.mxu1 %v1989_v0  ;;  %1754 = vmatprep.mubr.msk.f32.mxu0 %vm1990_vm0, %v1991_v8 }
  0x1f   :  { %1765 = vmatprep.mubr.msk.f32.mxu1 %vm1990_vm0, %v1991_v8 }
  0x20   :  { %1897 = vmatpush3.bf16.msra.mxu0 %v1896_v49 }
  0x21   :  { %1903 = vmatpush3.bf16.msra.mxu1 %v1902_v50  ;;  %1904 = vmatprep.subr.bf16.mxu0 %v1989_v0 }
  0x22   :  { %1910 = vmatprep.subr.bf16.mxu1 %v1989_v0 }
  0x23   :  { %1755 = vmatmul.mubr.msk.f32.vlgmr.msra.gmra.mrb[6].mxu0 %vm26_vm1, %v2059_v18 }
  0x24   :  { %1906 = vmatpush3.bf16.msra.mxu0 %v1905_v55  ;;  %1766 = vmatmul.mubr.msk.f32.vlgmr.msra.gmra.mrb[6].mxu1 %vm26_vm1, %v2059_v18  ;;  %v1506_v55 = vld [vmem:[%s2518_s2 + $0x4] ss:$0 sm:$0xff] }
  0x25   :  { %1912 = vmatpush3.bf16.msra.mxu1 %v1911_v56  ;;  %1907 = vmatprep.subr.bf16.mxu0 %v1989_v0 }
  0x26   :  { %1913 = vmatprep.subr.bf16.mxu1 %v1989_v0  ;;  %1776 = vmatprep.mubr.msk.f32.mxu0 %vm1990_vm0, %v1991_v8 }
  0x27   :  { %1787 = vmatprep.mubr.msk.f32.mxu1 %vm1990_vm0, %v1991_v8 }
  0x28   :  { %1909 = vmatpush3.bf16.msra.mxu0 %v1908_v61 }
  0x29   :  { %1915 = vmatpush3.bf16.msra.mxu1 %v1914_v62  ;;  %1916 = vmatprep.subr.bf16.mxu0 %v1989_v0  ;;  %v1513_v62 = vld [vmem:[%s2518_s2 + $0x5] ss:$0 sm:$0xff] }
  0x2a   :  { %1922 = vmatprep.subr.bf16.mxu1 %v1989_v0 }
  0x2b   :  { %1777 = vmatmul.mubr.msk.f32.vlgmr.msra.gmra.mrb[8].mxu0 %vm26_vm1, %v2059_v18 }
  0x2c   :  { %1918 = vmatpush3.bf16.msra.mxu0 %v1917_v4  ;;  %1788 = vmatmul.mubr.msk.f32.vlgmr.msra.gmra.mrb[8].mxu1 %vm26_vm1, %v2059_v18 }
  0x2d   :  { %1924 = vmatpush3.bf16.msra.mxu1 %v1923_v5  ;;  %1919 = vmatprep.subr.bf16.mxu0 %v1989_v0 }
  0x2e   :  { %1925 = vmatprep.subr.bf16.mxu1 %v1989_v0  ;;  %1798 = vmatprep.mubr.msk.f32.mxu0 %vm1990_vm0, %v1991_v8 }
  0x2f   :  { %1809 = vmatprep.mubr.msk.f32.mxu1 %vm1990_vm0, %v1991_v8 }
  0x30   :  { %1921 = vmatpush3.bf16.msra.mxu0 %v1920_v11 }
  0x31   :  { %1927 = vmatpush3.bf16.msra.mxu1 %v1926_v12  ;;  %1928 = vmatprep.subr.bf16.mxu0 %v1989_v0  ;;  %v1534_v12 = vld [vmem:[%s2518_s2 + $0x8] ss:$0 sm:$0xff] }
  0x32   :  { %1934 = vmatprep.subr.bf16.mxu1 %v1989_v0 }
  0x33   :  { %1799 = vmatmul.mubr.msk.f32.vlgmr.msra.gmra.mrb[10].mxu0 %vm26_vm1, %v2059_v18 }
  0x34   :  { %1930 = vmatpush3.bf16.msra.mxu0 %v1929_v17  ;;  %1810 = vmatmul.mubr.msk.f32.vlgmr.msra.gmra.mrb[10].mxu1 %vm26_vm1, %v2059_v18  ;;  %v1541_v17 = vld [vmem:[%s2518_s2 + $0x9] ss:$0 sm:$0xff] }
  0x35   :  { %1936 = vmatpush3.bf16.msra.mxu1 %v1935_v19  ;;  %1931 = vmatprep.subr.bf16.mxu0 %v1989_v0 }
  0x36   :  { %1937 = vmatprep.subr.bf16.mxu1 %v1989_v0  ;;  %1820 = vmatprep.mubr.msk.f32.mxu0 %vm1990_vm0, %v1991_v8 }
  0x37   :  { %1831 = vmatprep.mubr.msk.f32.mxu1 %vm1990_vm0, %v1991_v8 }
  0x38   :  { %1933 = vmatpush3.bf16.msra.mxu0 %v1932_v24 }
  0x39   :  { %1939 = vmatpush3.bf16.msra.mxu1 %v1938_v25  ;;  %1940 = vmatprep.subr.bf16.mxu0 %v1989_v0 }
  0x3a   :  { %1946 = vmatprep.subr.bf16.mxu1 %v1989_v0 }
  0x3b   :  { %1821 = vmatmul.mubr.msk.f32.vlgmr.msra.gmra.mrb[12].mxu0 %vm26_vm1, %v2059_v18 }
  0x3c   :  { %1942 = vmatpush3.bf16.msra.mxu0 %v1941_v30  ;;  %1832 = vmatmul.mubr.msk.f32.vlgmr.msra.gmra.mrb[12].mxu1 %vm26_vm1, %v2059_v18  ;;  %v1562_v30 = vld [vmem:[%s2518_s2 + $0xc] ss:$0 sm:$0xff] }
  0x3d   :  { %1948 = vmatpush3.bf16.msra.mxu1 %v1947_v31  ;;  %1943 = vmatprep.subr.bf16.mxu0 %v1989_v0 }
  0x3e   :  { %1949 = vmatprep.subr.bf16.mxu1 %v1989_v0  ;;  %1842 = vmatprep.mubr.msk.f32.mxu0 %vm1990_vm0, %v1991_v8 }
  0x3f   :  { %1853 = vmatprep.mubr.msk.f32.mxu1 %vm1990_vm0, %v1991_v8  ;;  %v1478_v8 = vld [vmem:[%s2518_s2] ss:$0 sm:$0xff] }
  0x40   :  { %1945 = vmatpush3.bf16.msra.mxu0 %v1944_v36 }
  0x41   :  { %1951 = vmatpush3.bf16.msra.mxu1 %v1950_v37  ;;  %v1569_v37 = vld [vmem:[%s2518_s2 + $0xd] ss:$0 sm:$0xff] }
  0x43   :  { %1843 = vmatmul.mubr.msk.f32.vlgmr.msra.gmra.mrb[14].mxu0 %vm26_vm1, %v2059_v18 }
  0x44   :  { %1854 = vmatmul.mubr.msk.f32.vlgmr.msra.gmra.mrb[14].mxu1 %vm26_vm1, %v2059_v18  ;;  %v1492_v18 = vld [vmem:[%s2518_s2 + $0x2] ss:$0 sm:$0xff] }
  0xde   :  { %v96_v38 = vpop.f32.mrb[0].mxu0 }
  0xdf   :  { %v1690_v39 = vpop.f32.mrb[1].mxu0  ;;  %v179_v40 = vpop.f32.mrb[0].mxu1  ;;  %v2314_v47 = vadd.f32 %v1478_v8, %v96_v38 }
  0xe0   :  { %v1701_v41 = vpop.f32.mrb[1].mxu1  ;;  %v2316_v48 = vadd.f32 %v1485_v45, %v179_v40 }
  0xe2   :  { %v1345_v54 = vmax.f32 %v2314_v47, %v2316_v48 }
  0xe6   :  { %v262_v42 = vpop.f32.mrb[2].mxu0 }
  0xe7   :  { %v1712_v0 = vpop.f32.mrb[3].mxu0  ;;  %v345_v43 = vpop.f32.mrb[2].mxu1  ;;  %v2318_v52 = vadd.f32 %v1492_v18, %v262_v42  ;;  %v1576_v42 = vld [vmem:[%s2518_s2 + $0xe] ss:$0 sm:$0xff] }
  0xe8   :  { %v1723_v44 = vpop.f32.mrb[3].mxu1  ;;  %v2329_v57 = vadd.f32 %v1499_v53, %v345_v43  ;;  %v1583_v0 = vld [vmem:[%s2518_s2 + $0xf] ss:$0 sm:$0xff] }
  0xe9   :  { %v1346_v56 = vmax.f32 %v1345_v54, %v2318_v52 }
  0xeb   :  { %v1347_v1 = vmax.f32 %v1346_v56, %v2329_v57 }
  0xee   :  { %v428_v46 = vpop.f32.mrb[4].mxu0 }
  0xef   :  { %v1734_v49 = vpop.f32.mrb[5].mxu0  ;;  %v511_v50 = vpop.f32.mrb[4].mxu1  ;;  %v2331_v59 = vadd.f32 %v1506_v55, %v428_v46 }
  0xf0   :  { %v1745_v51 = vpop.f32.mrb[5].mxu1  ;;  %v2341_v4 = vadd.f32 %v1513_v62, %v511_v50 }
  0xf1   :  { %v1348_v3 = vmax.f32 %v1347_v1, %v2331_v59 }
  0xf3   :  { %v1349_v9 = vmax.f32 %v1348_v3, %v2341_v4 }
  0xf6   :  { %v594_v58 = vpop.f32.mrb[6].mxu0 }
  0xf7   :  { %v1756_v60 = vpop.f32.mrb[7].mxu0  ;;  %v677_v61 = vpop.f32.mrb[6].mxu1  ;;  %v2343_v5 = vadd.f32 %v1520_v2, %v594_v58 }
  0xf8   :  { %v1767_v63 = vpop.f32.mrb[7].mxu1  ;;  %v2353_v15 = vadd.f32 %v1527_v6, %v677_v61 }
  0xf9   :  { %v1350_v14 = vmax.f32 %v1349_v9, %v2343_v5 }
  0xfb   :  { %v1351_v19 = vmax.f32 %v1350_v14, %v2353_v15 }
  0xfe   :  { %v760_v7 = vpop.f32.mrb[8].mxu0 }
  0xff   :  { %v1778_v10 = vpop.f32.mrb[9].mxu0  ;;  %v843_v11 = vpop.f32.mrb[8].mxu1  ;;  %v2355_v16 = vadd.f32 %v1534_v12, %v760_v7 }
 0x100   :  { %v1789_v13 = vpop.f32.mrb[9].mxu1  ;;  %v2365_v23 = vadd.f32 %v1541_v17, %v843_v11 }
 0x101   :  { %v1352_v22 = vmax.f32 %v1351_v19, %v2355_v16 }
 0x103   :  { %v1353_v29 = vmax.f32 %v1352_v22, %v2365_v23 }
 0x106   :  { %v926_v21 = vpop.f32.mrb[10].mxu0 }
 0x107   :  { %v1800_v24 = vpop.f32.mrb[11].mxu0  ;;  %v1009_v25 = vpop.f32.mrb[10].mxu1  ;;  %v2367_v27 = vadd.f32 %v1548_v20, %v926_v21 }
 0x108   :  { %v1811_v26 = vpop.f32.mrb[11].mxu1  ;;  %v2377_v32 = vadd.f32 %v1555_v28, %v1009_v25 }
 0x109   :  { %v1354_v31 = vmax.f32 %v1353_v29, %v2367_v27 }
 0x10b   :  { %v1355_v39 = vmax.f32 %v1354_v31, %v2377_v32 }
 0x10e   :  { %v1092_v33 = vpop.f32.mrb[12].mxu0 }
 0x10f   :  { %v2379_v34 = vadd.f32 %v1562_v30, %v1092_v33  ;;  %v1822_v35 = vpop.f32.mrb[13].mxu0  ;;  %v1175_v36 = vpop.f32.mrb[12].mxu1 }
 0x110   :  { %v1833_v38 = vpop.f32.mrb[13].mxu1  ;;  %v2386_v41 = vadd.f32 %v1569_v37, %v1175_v36 }
 0x111   :  { %v1356_v40 = vmax.f32 %v1355_v39, %v2379_v34 }
 0x113   :  { %v1357_v44 = vmax.f32 %v1356_v40, %v2386_v41 }
 0x116   :  { %v1258_v43 = vpop.f32.mrb[14].mxu0 }
 0x117   :  { %v2395_v8 = vadd.f32 %v1576_v42, %v1258_v43  ;;  %v1844_v45 = vpop.f32.mrb[15].mxu0  ;;  %v1341_v18 = vpop.f32.mrb[14].mxu1 }
 0x118   :  { %v2397_v46 = vadd.f32 %v1583_v0, %v1341_v18  ;;  %v1855_v49 = vpop.f32.mrb[15].mxu1 }
 0x119   :  { %v1358_v50 = vmax.f32 %v1357_v44, %v2395_v8 }
 0x11b   :  { %v2401_v51 = vmax.f32 %v1358_v50, %v2397_v46 }
 0x11d   :  { %v1360_v53 = vsub.f32 %v2314_v47, %v2401_v51  ;;  %v1363_v54 = vsub.f32 %v2316_v48, %v2401_v51  ;;  %v1367_v55 = vsub.f32 %v2318_v52, %v2401_v51  ;;  %v1371_v56 = vsub.f32 %v2329_v57, %v2401_v51 }
 0x11e   :  { %v1375_v62 = vsub.f32 %v2331_v59, %v2401_v51  ;;  %v1379_v1 = vsub.f32 %v2341_v4, %v2401_v51  ;;  %v1383_v3 = vsub.f32 %v2343_v5, %v2401_v51  ;;  %v1387_v7 = vsub.f32 %v2353_v15, %v2401_v51 }
 0x11f   :  { %v1361_v58 = vmul.f32 1.442695, %v1360_v53  ;;  %v1364_v60 = vmul.f32 1.442695, %v1363_v54  ;;  %v1368_v61 = vmul.f32 1.442695, %v1367_v55  ;;  %v1391_v10 = vsub.f32 %v2355_v16, %v2401_v51 }
 0x120   :  { %v1372_v63 = vmul.f32 1.442695, %v1371_v56  ;;  %v1376_v2 = vmul.f32 1.442695, %v1375_v62  ;;  %v1380_v6 = vmul.f32 1.442695, %v1379_v1  ;;  %v1395_v12 = vsub.f32 %v2365_v23, %v2401_v51 }
 0x121   :  { %1955 = vpow2.f32 %v1361_v58  ;;  %v1384_v9 = vmul.f32 1.442695, %v1383_v3  ;;  %v1388_v11 = vmul.f32 1.442695, %v1387_v7  ;;  %v1392_v17 = vmul.f32 1.442695, %v1391_v10 }
 0x122   :  { %1957 = vpow2.f32 %v1364_v60  ;;  %v1399_v19 = vsub.f32 %v2367_v27, %v2401_v51  ;;  %v1396_v22 = vmul.f32 1.442695, %v1395_v12  ;;  %v1403_v24 = vsub.f32 %v2377_v32, %v2401_v51 }
 0x123   :  { %1959 = vpow2.f32 %v1368_v61  ;;  %v1407_v29 = vsub.f32 %v2379_v34, %v2401_v51  ;;  %v1411_v35 = vsub.f32 %v2386_v41, %v2401_v51  ;;  %v1415_v39 = vsub.f32 %v2395_v8, %v2401_v51 }
 0x124   :  { %1961 = vpow2.f32 %v1372_v63  ;;  %v1400_v28 = vmul.f32 1.442695, %v1399_v19  ;;  %v1404_v33 = vmul.f32 1.442695, %v1403_v24  ;;  %v1419_v43 = vsub.f32 %v2397_v46, %v2401_v51 }
 0x125   :  { %1963 = vpow2.f32 %v1376_v2  ;;  %v1408_v38 = vmul.f32 1.442695, %v1407_v29  ;;  %v1412_v0 = vmul.f32 1.442695, %v1411_v35  ;;  %v1416_v18 = vmul.f32 1.442695, %v1415_v39 }
 0x126   :  { %1965 = vpow2.f32 %v1380_v6  ;;  %v1420_v53 = vmul.f32 1.442695, %v1419_v43 }
 0x127   :  { %1967 = vpow2.f32 %v1384_v9 }
 0x128   :  { %1969 = vpow2.f32 %v1388_v11 }
 0x129   :  { %1971 = vpow2.f32 %v1392_v17 }
 0x12a   :  { %1973 = vpow2.f32 %v1396_v22 }
 0x12b   :  { %v1956_v13 = vpop.eup %1955  ;;  %1975 = vpow2.f32 %v1400_v28 }
 0x12c   :  { %v1958_v14 = vpop.eup %1957  ;;  %1977 = vpow2.f32 %v1404_v33 }
 0x12d   :  { %v1366_v20 = vadd.f32 %v1958_v14, %v1956_v13  ;;  %v1960_v21 = vpop.eup %1959  ;;  %1979 = vpow2.f32 %v1408_v38 }
 0x12e   :  { %v1962_v26 = vpop.eup %1961  ;;  %1981 = vpow2.f32 %v1412_v0 }
 0x12f   :  { %v1370_v25 = vadd.f32 %v1960_v21, %v1366_v20  ;;  %v1964_v31 = vpop.eup %1963  ;;  %1983 = vpow2.f32 %v1416_v18 }
 0x130   :  { %v1966_v37 = vpop.eup %1965  ;;  %1985 = vpow2.f32 %v1420_v53 }
 0x131   :  { %v1374_v30 = vadd.f32 %v1962_v26, %v1370_v25  ;;  %v1968_v42 = vpop.eup %1967 }
 0x132   :  { %v1970_v45 = vpop.eup %1969 }
 0x133   :  { %v1378_v36 = vadd.f32 %v1964_v31, %v1374_v30  ;;  %v1972_v50 = vpop.eup %1971 }
 0x134   :  { %v1974_v55 = vpop.eup %1973 }
 0x135   :  { %v1382_v40 = vadd.f32 %v1966_v37, %v1378_v36  ;;  %v1976_v58 = vpop.eup %1975 }
 0x136   :  { %v1978_v61 = vpop.eup %1977 }
 0x137   :  { %v1386_v44 = vadd.f32 %v1968_v42, %v1382_v40  ;;  %v1980_v63 = vpop.eup %1979 }
 0x138   :  { %v1982_v2 = vpop.eup %1981 }
 0x139   :  { %v1390_v49 = vadd.f32 %v1970_v45, %v1386_v44  ;;  %v1984_v6 = vpop.eup %1983 }
 0x13a   :  { %v1986_v9 = vpop.eup %1985 }
 0x13b   :  { %v1394_v54 = vadd.f32 %v1972_v50, %v1390_v49 }
 0x13d   :  { %v1398_v56 = vadd.f32 %v1974_v55, %v1394_v54 }
 0x13f   :  { %v1402_v60 = vadd.f32 %v1976_v58, %v1398_v56 }
 0x141   :  { %v1406_v62 = vadd.f32 %v1978_v61, %v1402_v60 }
 0x143   :  { %v1410_v1 = vadd.f32 %v1980_v63, %v1406_v62 }
 0x145   :  { %v1414_v3 = vadd.f32 %v1982_v2, %v1410_v1 }
 0x147   :  { %v1418_v7 = vadd.f32 %v1984_v6, %v1414_v3 }
 0x149   :  { %v1422_v10 = vadd.f32 %v1986_v9, %v1418_v7 }
 0x14b   :  { %1987 = vlog2.f32 %v1422_v10 }
 0x155   :  { %v1988_v11 = vpop.eup %1987 }
 0x156   :  { %v1424_v12 = vmul.f32 0.6931472, %v1988_v11 }
 0x158   :  { %v1425_v13 = vadd.f32 %v1424_v12, %v2401_v51 }
 0x15a   :  { %v1426_v14 = vsub.f32 %v2314_v47, %v1425_v13  ;;  %v1427_v17 = vsub.f32 %v2316_v48, %v1425_v13  ;;  %v1428_v19 = vsub.f32 %v2318_v52, %v1425_v13  ;;  %v1429_v20 = vsub.f32 %v2329_v57, %v1425_v13 }
 0x15b   :  { %v1430_v21 = vsub.f32 %v2331_v59, %v1425_v13  ;;  %v1431_v22 = vsub.f32 %v2341_v4, %v1425_v13  ;;  %v1432_v24 = vsub.f32 %v2343_v5, %v1425_v13  ;;  %v1433_v25 = vsub.f32 %v2353_v15, %v1425_v13 }
 0x15c   :  { %v1434_v26 = vsub.f32 %v2355_v16, %v1425_v13  ;;  %v1435_v51 = vsub.f32 %v2365_v23, %v1425_v13  ;;  %v1436_v47 = vsub.f32 %v2367_v27, %v1425_v13  ;;  %v1437_v48 = vsub.f32 %v2377_v32, %v1425_v13  ;;  %1443 = vst.msk [vmem:[%s2519_s3] sm:$0xff] %vm1442_vm2, %v1426_v14 }
 0x15d   :  { %1585 = vst.msk [vmem:[%s2519_s3 + $0x8] sm:$0xff] %vm1442_vm2, %v1427_v17  ;;  %1586 = vst.msk [vmem:[%s2519_s3 + $0x10] sm:$0xff] %vm1442_vm2, %v1428_v19  ;;  %v1438_v52 = vsub.f32 %v2379_v34, %v1425_v13  ;;  %v1439_v57 = vsub.f32 %v2386_v41, %v1425_v13  ;;  %v1440_v59 = vsub.f32 %v2395_v8, %v1425_v13 }
 0x15e   :  { %1587 = vst.msk [vmem:[%s2519_s3 + $0x18] sm:$0xff] %vm1442_vm2, %v1429_v20  ;;  %v1441_v4 = vsub.f32 %v2397_v46, %v1425_v13  ;;  %1588 = vst.msk [vmem:[%s2519_s3 + $0x20] sm:$0xff] %vm1442_vm2, %v1430_v21 }
 0x15f   :  { %1589 = vst.msk [vmem:[%s2519_s3 + $0x28] sm:$0xff] %vm1442_vm2, %v1431_v22  ;;  %1590 = vst.msk [vmem:[%s2519_s3 + $0x30] sm:$0xff] %vm1442_vm2, %v1432_v24 }
 0x160   :  { %1591 = vst.msk [vmem:[%s2519_s3 + $0x38] sm:$0xff] %vm1442_vm2, %v1433_v25  ;;  %1592 = vst.msk [vmem:[%s2519_s3 + $0x40] sm:$0xff] %vm1442_vm2, %v1434_v26 }
 0x161   :  { %1593 = vst.msk [vmem:[%s2519_s3 + $0x48] sm:$0xff] %vm1442_vm2, %v1435_v51  ;;  %1594 = vst.msk [vmem:[%s2519_s3 + $0x50] sm:$0xff] %vm1442_vm2, %v1436_v47 }
 0x162   :  { %1595 = vst.msk [vmem:[%s2519_s3 + $0x58] sm:$0xff] %vm1442_vm2, %v1437_v48  ;;  %1596 = vst.msk [vmem:[%s2519_s3 + $0x60] sm:$0xff] %vm1442_vm2, %v1438_v52 }
 0x163   :  { %1597 = vst.msk [vmem:[%s2519_s3 + $0x68] sm:$0xff] %vm1442_vm2, %v1439_v57  ;;  %1598 = vst.msk [vmem:[%s2519_s3 + $0x70] sm:$0xff] %vm1442_vm2, %v1440_v59 }
 0x164   :  { %1599 = vst.msk [vmem:[%s2519_s3 + $0x78] sm:$0xff] %vm1442_vm2, %v1441_v4 }

</bundles_post_ra>
